<compile_context>
chip_gen: v6e
topology: v6e:2x2x1
jax: 0.10.0
libtpu: 0.0.40
codegen_flags: <defaults>
</compile_context>

<pallas_src>
import functools
import math

import jax
import jax.numpy as jnp
from jax.experimental import pallas as pl
from jax.experimental.pallas import tpu as pltpu


VMEM_LIMIT = 32 * 1024 * 1024  # safe scoped limit on v5e / v6e / v7x.


def _pick_tile(dim, pref):
    """Use `pref` if it evenly divides `dim`, else fall back to the full dim."""
    return pref if dim % pref == 0 else dim


# ----------------------------- Pallas kernels -----------------------------

def _emb_ln_kernel(x_ref, g_ref, b_ref, o_ref, *, eps):
    """No-residual LayerNorm over [tm, H] (embedding LN). f32 math inside."""
    x = x_ref[...].astype(jnp.float32)
    mu = jnp.mean(x, axis=-1, keepdims=True)
    var = jnp.mean((x - mu) ** 2, axis=-1, keepdims=True)
    y = (x - mu) * jax.lax.rsqrt(var + eps) * g_ref[...] + b_ref[...]
    o_ref[...] = y.astype(o_ref.dtype)


def _attn_block_kernel(mask_ref, h_ref, wqkv_ref, bqkv_ref, wo_ref, bo_ref,
                       g_ref, be_ref, o_ref, qkv_ref, ctx_ref,
                       *, nh, dh, hidden, scale, eps):
    """Fused attention block for ONE batch element (grid = (B,)).

    h_ref:    [S, H]  bf16 layer input (also the residual)
    wqkv_ref: [H, 3H] bf16 fused Q|K|V weight (resident across grid steps)
    wo_ref:   [H, H]  bf16 attention output weight
    mask_ref: [1, 1, S] raw attention mask (1 = token, 0 = pad)
    qkv_ref:  [S, 3H] bf16 VMEM scratch (never written to HBM)
    ctx_ref:  [S, H]  bf16 VMEM scratch
    o_ref:    [S, H]  LayerNorm(ctx @ wo + bo + h)
    """
    h = h_ref[...]

    # 1) Fused QKV projection (one MXU matmul, f32 accumulate, bias add).
    qkv = jnp.dot(h, wqkv_ref[...], preferred_element_type=jnp.float32)
    qkv_ref[...] = (qkv + bqkv_ref[...]).astype(qkv_ref.dtype)

    # 2) Per-head attention on lane-aligned 128-wide slices of the scratch.
    #    HF extended-attention-mask semantics: (1 - mask) * -10000 bias.
    bias = (1.0 - mask_ref[0].astype(jnp.float32)) * -10000.0        # [1, S]
    # TODO(synk): for nh > ~4 convert this static unroll to lax.fori_loop with
    # pl.ds(pl.multiple_of(h*dh, 128), dh) slices to bound vreg live ranges.
    for hh in range(nh):                                             # nh == 2
        q = qkv_ref[:, hh * dh:(hh + 1) * dh]
        k = qkv_ref[:, hidden + hh * dh: hidden + (hh + 1) * dh]
        v = qkv_ref[:, 2 * hidden + hh * dh: 2 * hidden + (hh + 1) * dh]
        # scores = q @ k^T  (contract last dims, no explicit transpose)
        s = jax.lax.dot_general(q, k, (((1,), (1,)), ((), ())),
                                preferred_element_type=jnp.float32) * scale
        s = s + bias
        s = s - jnp.max(s, axis=-1, keepdims=True)
        p = jnp.exp(s)
        p = p * pl.reciprocal(jnp.sum(p, axis=-1, keepdims=True), approx=True)
        ctx = jnp.dot(p.astype(v.dtype), v, preferred_element_type=jnp.float32)
        ctx_ref[:, hh * dh:(hh + 1) * dh] = ctx.astype(ctx_ref.dtype)

    # 3) Output projection + residual + LayerNorm epilogue (f32 math).
    out = jnp.dot(ctx_ref[...], wo_ref[...],
                  preferred_element_type=jnp.float32)
    out = out + bo_ref[...] + h.astype(jnp.float32)
    mu = jnp.mean(out, axis=-1, keepdims=True)
    var = jnp.mean((out - mu) ** 2, axis=-1, keepdims=True)
    y = (out - mu) * jax.lax.rsqrt(var + eps) * g_ref[...] + be_ref[...]
    o_ref[...] = y.astype(o_ref.dtype)


def _ffn_block_kernel(h_ref, w1_ref, b1_ref, w2_ref, b2_ref, g_ref, be_ref,
                      o_ref, act_ref, *, eps):
    """Fused FFN: LayerNorm(gelu(h @ w1 + b1) @ w2 + b2 + h) per [tm, H] tile.

    The [tm, I] GELU activation lives only in the `act_ref` VMEM scratch.
    """
    h = h_ref[...]
    a = jnp.dot(h, w1_ref[...], preferred_element_type=jnp.float32)
    a = a + b1_ref[...]
    # TODO(synk): HF BERT uses exact erf-GELU; tanh approximation is used for
    # guaranteed Mosaic lowering (difference ~1e-3).
    a = jax.nn.gelu(a, approximate=True)
    act_ref[...] = a.astype(act_ref.dtype)

    y = jnp.dot(act_ref[...], w2_ref[...], preferred_element_type=jnp.float32)
    y = y + b2_ref[...] + h.astype(jnp.float32)
    mu = jnp.mean(y, axis=-1, keepdims=True)
    var = jnp.mean((y - mu) ** 2, axis=-1, keepdims=True)
    out = (y - mu) * jax.lax.rsqrt(var + eps) * g_ref[...] + be_ref[...]
    o_ref[...] = out.astype(o_ref.dtype)


# ----------------------------- kernel wrappers -----------------------------

def embedding_layernorm(x, gamma, beta, eps=1e-12, out_dtype=jnp.bfloat16,
                        tm_pref=128):
    M, D = x.shape
    tm = _pick_tile(M, tm_pref)
    return pl.pallas_call(
        functools.partial(_emb_ln_kernel, eps=eps),
        out_shape=jax.ShapeDtypeStruct((M, D), out_dtype),
        grid=(M // tm,),
        in_specs=[pl.BlockSpec((tm, D), lambda i: (i, 0)),
                  pl.BlockSpec((1, D), lambda i: (0, 0)),
                  pl.BlockSpec((1, D), lambda i: (0, 0))],
        out_specs=pl.BlockSpec((tm, D), lambda i: (i, 0)),
        compiler_params=pltpu.CompilerParams(
            dimension_semantics=("parallel",),
            vmem_limit_bytes=VMEM_LIMIT),
    )(x, gamma.reshape(1, D), beta.reshape(1, D))


def attention_block(h, mask3, lyr, batch, seq, nh, dh, hidden, scale,
                    eps=1e-12, out_dtype=jnp.bfloat16):
    """One fused pallas_call for the whole self-attention sub-layer.

    grid = (batch,) "parallel": with B >= 2 both v7x TensorCores are busy;
    on single-TC v5e/v6e it is just a 2-step loop with resident weights.
    """
    M = batch * seq
    H3 = 3 * hidden
    return pl.pallas_call(
        functools.partial(_attn_block_kernel, nh=nh, dh=dh, hidden=hidden,
                          scale=scale, eps=eps),
        out_shape=jax.ShapeDtypeStruct((M, hidden), out_dtype),
        grid=(batch,),
        in_specs=[
            pl.BlockSpec((1, 1, seq), lambda b: (b, 0, 0)),          # mask
            pl.BlockSpec((seq, hidden), lambda b: (b, 0)),           # h
            pl.BlockSpec((hidden, H3), lambda b: (0, 0)),            # wqkv
            pl.BlockSpec((1, H3), lambda b: (0, 0)),                 # bqkv
            pl.BlockSpec((hidden, hidden), lambda b: (0, 0)),        # wo
            pl.BlockSpec((1, hidden), lambda b: (0, 0)),             # bo
            pl.BlockSpec((1, hidden), lambda b: (0, 0)),             # ln gamma
            pl.BlockSpec((1, hidden), lambda b: (0, 0)),             # ln beta
        ],
        out_specs=pl.BlockSpec((seq, hidden), lambda b: (b, 0)),
        scratch_shapes=[pltpu.VMEM((seq, H3), jnp.bfloat16),
                        pltpu.VMEM((seq, hidden), jnp.bfloat16)],
        compiler_params=pltpu.CompilerParams(
            dimension_semantics=("parallel",),
            vmem_limit_bytes=VMEM_LIMIT),
    )(mask3, h,
      lyr["wqkv"], lyr["bqkv"].reshape(1, H3),
      lyr["wo"], lyr["bo"].reshape(1, hidden),
      lyr["ln1_g"].reshape(1, hidden), lyr["ln1_b"].reshape(1, hidden))


def ffn_block(h, lyr, eps=1e-12, out_dtype=jnp.bfloat16, tm_pref=128):
    """One fused pallas_call for the whole FFN sub-layer (w1+GELU+w2+LN).

    tm_pref=128 keeps >= 2 row blocks at M=256 so v7x can shard across its
    two TensorCores; on v5e/v6e the extra grid step costs ~0.35 us.
    """
    M, H = h.shape
    I = lyr["w1"].shape[1]
    tm = _pick_tile(M, tm_pref)
    return pl.pallas_call(
        functools.partial(_ffn_block_kernel, eps=eps),
        out_shape=jax.ShapeDtypeStruct((M, H), out_dtype),
        grid=(M // tm,),
        in_specs=[
            pl.BlockSpec((tm, H), lambda i: (i, 0)),                 # h
            pl.BlockSpec((H, I), lambda i: (0, 0)),                  # w1
            pl.BlockSpec((1, I), lambda i: (0, 0)),                  # b1
            pl.BlockSpec((I, H), lambda i: (0, 0)),                  # w2
            pl.BlockSpec((1, H), lambda i: (0, 0)),                  # b2
            pl.BlockSpec((1, H), lambda i: (0, 0)),                  # ln gamma
            pl.BlockSpec((1, H), lambda i: (0, 0)),                  # ln beta
        ],
        out_specs=pl.BlockSpec((tm, H), lambda i: (i, 0)),
        scratch_shapes=[pltpu.VMEM((tm, I), jnp.bfloat16)],
        compiler_params=pltpu.CompilerParams(
            dimension_semantics=("parallel",),
            vmem_limit_bytes=VMEM_LIMIT),
    )(h, lyr["w1"], lyr["b1"].reshape(1, I),
      lyr["w2"], lyr["b2"].reshape(1, H),
      lyr["ln2_g"].reshape(1, H), lyr["ln2_b"].reshape(1, H))


# ------------------------- parameters / forward ---------------------------

# TPU-friendly toy config: hidden and head_dim are multiples of 128 so every
# block / head slice is lane-dense and (8,128)-aligned.
CFG = dict(vocab=128, hidden=256, heads=2, intermediate=512, layers=2,
           max_pos=128, type_vocab=2)


def init_params(key, cfg):
    H, I = cfg["hidden"], cfg["intermediate"]
    n_keys = 3 + cfg["layers"] * 4
    keys = iter(jax.random.split(key, n_keys))

    def nrm(shape, dtype=jnp.float32):
        return (0.02 * jax.random.normal(next(keys), shape,
                                         jnp.float32)).astype(dtype)

    params = {
        # bf16 embedding tables -> bf16 gather/sum intermediate (half traffic)
        "word_emb": nrm((cfg["vocab"], H), jnp.bfloat16),
        "pos_emb": nrm((cfg["max_pos"], H), jnp.bfloat16),
        "type_emb": nrm((cfg["type_vocab"], H), jnp.bfloat16),
        "emb_ln_g": jnp.ones((H,), jnp.float32),
        "emb_ln_b": jnp.zeros((H,), jnp.float32),
        "layers": [],
    }
    for _ in range(cfg["layers"]):
        params["layers"].append({
            # fused Q|K|V projection weight/bias
            "wqkv": nrm((H, 3 * H), jnp.bfloat16),
            "bqkv": jnp.zeros((3 * H,), jnp.float32),
            "wo": nrm((H, H), jnp.bfloat16),
            "bo": jnp.zeros((H,), jnp.float32),
            "ln1_g": jnp.ones((H,), jnp.float32),
            "ln1_b": jnp.zeros((H,), jnp.float32),
            "w1": nrm((H, I), jnp.bfloat16),
            "b1": jnp.zeros((I,), jnp.float32),
            "w2": nrm((I, H), jnp.bfloat16),
            "b2": jnp.zeros((H,), jnp.float32),
            "ln2_g": jnp.ones((H,), jnp.float32),
            "ln2_b": jnp.zeros((H,), jnp.float32),
        })
    return params


def bert_forward(params, x, segs, mask, cfg):
    B, S = x.shape
    H = cfg["hidden"]
    nh = cfg["heads"]
    dh = H // nh
    scale = 1.0 / math.sqrt(dh)

    # Embeddings: gathers + sum are JAX glue (bf16 intermediate); LayerNorm is
    # a Pallas kernel with f32 internal math.
    pos = jnp.arange(S)
    emb = (params["word_emb"][x]
           + params["pos_emb"][pos][None, :, :]
           + params["type_emb"][segs])                            # bf16 [B,S,H]
    h = embedding_layernorm(emb.reshape(B * S, H),
                            params["emb_ln_g"], params["emb_ln_b"])

    # Raw mask handed to the attention kernel; the -10000 bias is computed
    # in-kernel (HF BertModel extended attention mask semantics).
    mask3 = mask.astype(jnp.float32).reshape(B, 1, S)

    n_layers = len(params["layers"])
    for li, lyr in enumerate(params["layers"]):
        # Fused QKV + per-head attention + output proj + residual + LN.
        h = attention_block(h, mask3, lyr, B, S, nh, dh, H, scale)
        # Fused FFN (w1+GELU+w2+residual+LN); last layer emits f32 directly
        # (top_vec dtype), avoiding a wrapper-side convert pass.
        out_dtype = jnp.float32 if li == n_layers - 1 else jnp.bfloat16
        h = ffn_block(h, lyr, out_dtype=out_dtype)

    # top_vec (last hidden state), f32 like the torch module.
    return h.reshape(B, S, H)


# ---------------------------------- main -----------------------------------

if __name__ == "__main__":
    key = jax.random.PRNGKey(0)
    kp, kx, ks = jax.random.split(key, 3)

    B, S = 2, 128
    params = init_params(kp, CFG)

    x = jax.random.randint(kx, (B, S), 0, CFG["vocab"], dtype=jnp.int32)
    segs = jax.random.randint(ks, (B, S), 0, CFG["type_vocab"],
                              dtype=jnp.int32)
    # mask: 1 = real token, 0 = padding (pad the tail of the second example)
    mask = jnp.concatenate(
        [jnp.ones((1, S), jnp.float32),
         jnp.concatenate([jnp.ones((1, S - 16), jnp.float32),
                          jnp.zeros((1, 16), jnp.float32)], axis=1)], axis=0)

    top_vec = bert_forward(params, x, segs, mask, CFG)
    top_vec = jax.block_until_ready(top_vec)

    assert top_vec.shape == (B, S, CFG["hidden"])
    assert top_vec.dtype == jnp.float32
    assert bool(jnp.all(jnp.isfinite(top_vec)))
    print("KERNEL_OK")
</pallas_src>

<mosaic_0001>
module attributes {stable_mosaic.version = 11 : i64} {
  func.func @_emb_ln_kernel(%arg0: i32, %arg1: memref<128x256xbf16, #tpu.memory_space<vmem>>, %arg2: memref<1x256xf32, #tpu.memory_space<vmem>>, %arg3: memref<1x256xf32, #tpu.memory_space<vmem>>, %arg4: memref<128x256xbf16, #tpu.memory_space<vmem>>) attributes {dimension_semantics = [#tpu.dimension_semantics<parallel>], iteration_bounds = array<i64: 2>, scalar_prefetch = 0 : i64, scratch_operands = 0 : i64, tpu.core_type = #tpu.core_type<tc>, window_params = [{transform_indices = @transform_0, window_bounds = array<i64: 128, 256>}, {pipeline_mode = #tpu.pipeline_mode<synchronous>, transform_indices = @transform_1, window_bounds = array<i64: 1, 256>}, {pipeline_mode = #tpu.pipeline_mode<synchronous>, transform_indices = @transform_2, window_bounds = array<i64: 1, 256>}, {transform_indices = @transform_3, window_bounds = array<i64: 128, 256>}]} {
    %c0 = arith.constant 0 : index
    %c0_0 = arith.constant 0 : index
    %0 = vector.load %arg1[%c0, %c0_0] : memref<128x256xbf16, #tpu.memory_space<vmem>>, vector<128x256xbf16>
    %1 = arith.extf %0 : vector<128x256xbf16> to vector<128x256xf32>
    %cst = arith.constant dense<0.000000e+00> : vector<128xf32>
    %2 = vector.multi_reduction <add>, %1, %cst [1] : vector<128x256xf32> to vector<128xf32>
    %3 = vector.shape_cast %2 : vector<128xf32> to vector<128x1xf32>
    %cst_1 = arith.constant 2.560000e+02 : f32
    %4 = vector.broadcast %cst_1 : f32 to vector<128x1xf32>
    %5 = arith.divf %3, %4 : vector<128x1xf32>
    %6 = vector.broadcast %5 : vector<128x1xf32> to vector<128x256xf32>
    %7 = arith.subf %1, %6 : vector<128x256xf32>
    %8 = arith.mulf %7, %7 : vector<128x256xf32>
    %cst_2 = arith.constant dense<0.000000e+00> : vector<128xf32>
    %9 = vector.multi_reduction <add>, %8, %cst_2 [1] : vector<128x256xf32> to vector<128xf32>
    %10 = vector.shape_cast %9 : vector<128xf32> to vector<128x1xf32>
    %cst_3 = arith.constant 2.560000e+02 : f32
    %11 = vector.broadcast %cst_3 : f32 to vector<128x1xf32>
    %12 = arith.divf %10, %11 : vector<128x1xf32>
    %13 = vector.broadcast %5 : vector<128x1xf32> to vector<128x256xf32>
    %14 = arith.subf %1, %13 : vector<128x256xf32>
    %cst_4 = arith.constant 9.99999996E-13 : f32
    %15 = vector.broadcast %cst_4 : f32 to vector<128x1xf32>
    %16 = arith.addf %12, %15 : vector<128x1xf32>
    %17 = math.rsqrt %16 : vector<128x1xf32>
    %18 = vector.broadcast %17 : vector<128x1xf32> to vector<128x256xf32>
    %19 = arith.mulf %14, %18 : vector<128x256xf32>
    %c0_5 = arith.constant 0 : index
    %c0_6 = arith.constant 0 : index
    %20 = vector.load %arg2[%c0_5, %c0_6] : memref<1x256xf32, #tpu.memory_space<vmem>>, vector<1x256xf32>
    %21 = vector.broadcast %20 : vector<1x256xf32> to vector<128x256xf32>
    %22 = arith.mulf %19, %21 : vector<128x256xf32>
    %c0_7 = arith.constant 0 : index
    %c0_8 = arith.constant 0 : index
    %23 = vector.load %arg3[%c0_7, %c0_8] : memref<1x256xf32, #tpu.memory_space<vmem>>, vector<1x256xf32>
    %24 = vector.broadcast %23 : vector<1x256xf32> to vector<128x256xf32>
    %25 = arith.addf %22, %24 : vector<128x256xf32>
    %26 = arith.truncf %25 : vector<128x256xf32> to vector<128x256xbf16>
    %c0_9 = arith.constant 0 : index
    %c0_10 = arith.constant 0 : index
    %27 = vector.load %arg4[%c0_9, %c0_10] : memref<128x256xbf16, #tpu.memory_space<vmem>>, vector<128x256xbf16>
    tpu.vector_store %arg4[%c0_9, %c0_10], %26 {strides = array<i32>} : memref<128x256xbf16, #tpu.memory_space<vmem>>, vector<128x256xbf16>,
    return
  }
  func.func @transform_0(%arg0: i32) -> (i32, i32) {
    %c0_i32 = arith.constant 0 : i32
    %c0_i32_0 = arith.constant 0 : i32
    return %arg0, %c0_i32 : i32, i32
  }
  func.func @transform_1(%arg0: i32) -> (i32, i32) {
    %c0_i32 = arith.constant 0 : i32
    %c0_i32_0 = arith.constant 0 : i32
    %c0_i32_1 = arith.constant 0 : i32
    return %c0_i32, %c0_i32_0 : i32, i32
  }
  func.func @transform_2(%arg0: i32) -> (i32, i32) {
    %c0_i32 = arith.constant 0 : i32
    %c0_i32_0 = arith.constant 0 : i32
    %c0_i32_1 = arith.constant 0 : i32
    return %c0_i32, %c0_i32_0 : i32, i32
  }
  func.func @transform_3(%arg0: i32) -> (i32, i32) {
    %c0_i32 = arith.constant 0 : i32
    %c0_i32_0 = arith.constant 0 : i32
    return %arg0, %c0_i32 : i32, i32
  }
}

</mosaic_0001>

<bundles_post_ra>
// kernel: tpu_custom_call.1
= control target key start
LH: loop header
LB: loop body
LE: loop exit
PB: predicated region body
PF: predicated region fallthrough
CT: control target
= control target key end

     0   :  { %8 = vsyncpa [#allocation3], 0  ;;  %s1755_s0 = inlined_call_operand.hbm [shape: bf16[256,256], index: 0, kind: input, shape index: {}]   ;;  %s1756_s1 = inlined_call_operand.hbm [shape: f32[1,256], index: 1, kind: input, shape index: {}]   ;;  %s1757_s2 = inlined_call_operand.vmem [shape: f32[1,256], index: 2, kind: input, shape index: {}]   ;;  %s1758_s3 = inlined_call_operand.hbm [shape: bf16[256,256], index: 3, kind: output, shape index: {}]  }
   0x1   :  { %10 = vsyncpa [#allocation3 + $0x1], 0 }
   0x2   :  { %11 = vsyncpa [#allocation6], 0 }
   0x3   :  { %12 = vsyncpa [#allocation4], 0 }
   0x4   :  { %14 = vsyncpa [#allocation4 + $0x1], 0  ;;  %s1106_s12 = smov 0   ;;  %s1108_s13 = smov 0  }
   0x5   :  { %s1110_s14 = smov 0   ;;  %s1112_s15 = smov 0  }
   0x6 LB: > { %s1127_s16 = sadd.s32 4294967295, %s1077_s15   ;;  %s808_s17 = sadd.s32 4294967294, %s1077_s15   ;;  %s1077_s15 = sphi %s1112_s15, %s1781_s15   ;;  %s1073_s14 = sphi %s1110_s14, %s1780_s14   ;;  %s1069_s13 = sphi %s1108_s13, %s1779_s13   ;;  %s1065_s12 = sphi %s1106_s12, %s1778_s12  }
   0x7   : > { %s1131_s18 = sadd.s32 1, %s1077_s15   ;;  %s27_s19 = sadd.s32 1, %s1073_s14 }
   0x8   : > { %s24_s20 = ssub.s32 %s1077_s15, %s1131_s18  ;;  %p34_p0 = scmp.ne.s32.totalorder %s1073_s14, %s1069_s13 }
   0x9   : > { %p25_p1 = scmp.eq.s32.totalorder %s24_s20, 0  ;;  %p35_p2 = scmp.eq.s32.totalorder %s1077_s15, 0 }
   0xa   : > { %p40_p3 = scmp.ne.s32.totalorder %s1069_s13, %s1065_s12  ;;  %p1759_p4 = scmp.eq.s32.totalorder %s1127_s16, 0 }
   0xb   : > { %s1143_s21 = scalar_select %p25_p1, %s1073_s14, %s27_s19  }
   0xc   : > { %p1145_p5 = por %p35_p2, %p34_p0  ;;  %p1151_p6 = por %p1759_p4, %p40_p3 }
   0xd   : > { %p106_p7 = scmp.eq.s32.totalorder %s1127_s16, 1  ;;  %p112_p8 = scmp.eq.s32.totalorder %s808_s17, 1 }
   0xe   : > { %s1764_s23 = scalar_select %p1151_p6, 1, 0 }
   0xf   : > { %p809_p9 = scmp.ge.s32.totalorder %s1077_s15, 1  ;;  %p119_p10 = scmp.lt.s32.totalorder %s1077_s15, 3 }
  0x10   : > { %p1158_p11 = por %p106_p7, %p34_p0  ;;  %p1162_p12 = por %p112_p8, %p40_p3 }
  0x11   : > { %p1166_p13 = pnand %p809_p9, %p119_p10  ;;  %s1079_s27 = smov [#allocation5]  }
  0x12   : > { %s1765_s24 = scalar_select %p1158_p11, 1, 0 }
  0x13   : > { %s1766_s25 = scalar_select %p1162_p12, 1, 0 }
  0x14   : > { %s1767_s26 = scalar_select %p1166_p13, 1, 0 }
  0x15   : > { %p870_p2 = pneg %p1166_p13  ;;  %s132_s28 = sshll.u32 %s1079_s27, 4  ;;  %s133_s28 = int_to_ptr.vmem [resolvable:$true] %s132_s28 }
  0x16   : > { %p883_p4 = scmp.lt.s32.totalorder %s1077_s15, 2  ;;  %p1768_p0 = scmp.eq.s32.totalorder %s1127_s16, 0 }
  0x17   : > { %s146_s30 = sand.u32 1, %s1073_s14   ;;  %s966_s6 = scalar_lea.vmem %s133_s28, 32 }
  0x18   : > { %p1176_p7 = pnand %p870_p2, %p1768_p0  ;;  %p1183_p3 = pnand %p883_p4, %p1145_p5 }
  0x19   : > { %s812_s5 = sshll.u32 %s146_s30, 7  ;;  %p967_p9 = scmp.ne.s32.totalorder %s133_s28, %s966_s6 }
  0x1a   : > { %p957_p8 = pneg %p1176_p7  ;;  %p974_p12 = scmp.lt.s32.totalorder %s133_s28, %s133_s28 }
  0x1b   : > { %p975_p11 = scmp.lt.s32.totalorder %s966_s6, %s966_s6 }
  0x1c   : > { %p969_p10 = pnand %p967_p9, %p957_p8 }
  0x1d   : > { %p976_p2 = por %p975_p11, %p974_p12 }
  0x1e   : > { %p970_p1 = pneg %p969_p10 }
  0x20   : > { %p977_p0 = pnand %p976_p2, %p970_p1 }
  0x22   : > { %980 = shalt.err (!%p977_p0)
}
  0x23   : > { %873 = dma.hbm_to_vmem [thread:$0]  (!%p1176_p7), %s1756_s1, 32, %s133_s28, [#allocation6]  }
  0x24   : > { %s843_s9 = sshll.u32 %s1077_s15, 11  ;;  %s150_s10 = scalar_lea.vmem [#allocation2], %s812_s5 }
  0x25   : > { %s158_s11 = sshll.u32 %s150_s10, 4  ;;  %s1198_s20 = scalar_lea.hbm %s1755_s0, %s843_s9  ;;  %s1200_s11 = int_to_ptr.vmem [resolvable:$true] %s158_s11 }
  0x26   : > { %s1202_s22 = scalar_lea.sflag [#allocation3], %s146_s30  ;;  %s981_s27 = scalar_lea.hbm %s1198_s20, 2048 }
  0x27   : > { %p982_p4 = scmp.ne.s32.totalorder %s1198_s20, %s981_s27  ;;  %p983_p5 = pneg %p1183_p3 }
  0x28   : > { %s986_s5 = scalar_lea.hbm %s1755_s0, 4096  ;;  %p987_p1 = scmp.lt.s32.totalorder %s1198_s20, %s1755_s0 }
  0x29   : > { %p984_p11 = pnand %p983_p5, %p982_p4  ;;  %p988_p7 = scmp.lt.s32.totalorder %s986_s5, %s981_s27 }
  0x2b   : > { %p985_p12 = pneg %p984_p11  ;;  %p989_p8 = por %p988_p7, %p987_p1 }
  0x2d   : > { %p990_p9 = pnand %p989_p8, %p985_p12 }
  0x2f   : > { %993 = shalt.err (!%p990_p9)
}
  0x30   : > { %s994_s30 = scalar_lea.vmem %s1200_s11, 2048  ;;  %s1080_s8 = smov [#allocation2]  }
  0x31   : > { %p995_p10 = scmp.ne.s32.totalorder %s1200_s11, %s994_s30  ;;  %s999_s9 = sshll.u32 %s1080_s8, 4  ;;  %s1000_s9 = int_to_ptr.vmem [resolvable:$false] %s999_s9 }
  0x32   : > { %s1001_s10 = scalar_lea.vmem %s1000_s9, 4096  ;;  %p1002_p4 = scmp.lt.s32.totalorder %s1200_s11, %s1000_s9 }
  0x33   : > { %p997_p2 = pnand %p995_p10, %p983_p5  ;;  %p1003_p11 = scmp.lt.s32.totalorder %s1001_s10, %s994_s30 }
  0x35   : > { %p998_p0 = pneg %p997_p2  ;;  %p1004_p6 = por %p1003_p11, %p1002_p4 }
  0x37   : > { %p1005_p13 = pnand %p1004_p6, %p998_p0 }
  0x39   : > { %1008 = shalt.err (!%p1005_p13)
}
  0x3a   : > { %s1081_s17 = smov 128   ;;  %s1082_s19 = smov 8  }
  0x3b   : > { %877 = dma.hbm_to_vmem [thread:$0]  (!%p1183_p3), %s1198_s20, 2048, %s1200_s11, %s1202_s22, %s1081_s17, %s1081_s17, %s1082_s19  }
  0x3c   : > { %p1771_p5 = scmp.ne.s32.totalorder %s1767_s26, 0 }
  0x3d   : > { %s1226_s27 = sand.u32 (!%p1771_p5), 1, %s1069_s13   ;;  %p1772_p6 = scmp.ne.s32.totalorder (!%p1771_p5), %s1764_s23, 0 }
  0x3e   : > { %170 = sbr.rel (%p1771_p5) target bundleno = 441 (0x1b9), region = 32  ;;  %s817_s28 = sshll.u32 (!%p1771_p5), %s1226_s27, 7 }
  0x3f   : > { %s173_s29 = scalar_lea.sflag (!%p1771_p5), [#allocation3], %s1226_s27  ;;  %s1232_s5 = scalar_lea.vmem (!%p1771_p5), [#allocation2], %s817_s28 }
  0x43   : > { %1052 = dma.done.wait (%p1772_p6), %s173_s29, 2048  }
  0x44   : > { %1054 = vsyncadd (%p1772_p6), %s173_s29, 4294965248  ;;  %p1773_p13 = scmp.eq.s32.totalorder %s1127_s16, 0 }
  0x46   : > { %1056 = dma.done.wait (%p1773_p13), [#allocation6], 32   ;;  %p1774_p3 = pmov %p1773_p13 }
  0x47   : > { %v1243_v0 = vld [vmem:[%s1232_s5] sm:$0xff]  ;;  %v1246_v1 = vld [vmem:[%s1232_s5 + $0x10] sm:$0xff]  ;;  %v1249_v2 = vld [vmem:[%s1232_s5 + $0x8] sm:$0xff]  ;;  %s1605_s4 = scalar_lea.vmem [#allocation7], %s817_s28  ;;  %s861_s11 = sshll.u32 %s1127_s16, 11 }
  0x48   : > { %1058 = vsyncadd (%p1774_p3), [#allocation6], 4294967264  ;;  %v221_v3 = vunpack.c.l.bf16 %v1243_v0  ;;  %v222_v4 = vunpack.c.h.bf16 %v1243_v0  ;;  %v225_v5 = vunpack.c.l.bf16 %v1246_v1  ;;  %v226_v6 = vunpack.c.h.bf16 %v1246_v1  ;;  %v1256_v7 = vld [vmem:[%s1232_s5 + $0x18] sm:$0xff]  ;;  %v1259_v8 = vld [vmem:[%s1232_s5 + $0x20] sm:$0xff]  ;;  %s725_s20 = sshll.u32 %s1605_s4, 4  ;;  %s1707_s7 = scalar_lea.hbm %s1758_s3, %s861_s11  ;;  %s1709_s20 = int_to_ptr.vmem [resolvable:$true] %s725_s20 }
  0x49   : > { %v223_v9 = vunpack.c.l.bf16 %v1249_v2  ;;  %v224_v10 = vunpack.c.h.bf16 %v1249_v2  ;;  %v227_v11 = vunpack.c.l.bf16 %v1256_v7  ;;  %v228_v12 = vunpack.c.h.bf16 %v1256_v7  ;;  %v1266_v13 = vld [vmem:[%s1232_s5 + $0x28] sm:$0xff]  ;;  %v1289_v22 = vld [vmem:[%s1232_s5 + $0x30] sm:$0xff]  ;;  %v1292_v23 = vld [vmem:[%s1232_s5 + $0x38] sm:$0xff]  ;;  %s711_s16 = scalar_lea.sflag [#allocation4], %s1226_s27  ;;  %s1009_s30 = scalar_lea.vmem %s1709_s20, 2048 }
  0x4a   : > { %v253_v14 = vadd.f32 %v222_v4, %v221_v3  ;;  %v259_v15 = vadd.f32 %v226_v6, %v225_v5  ;;  %v229_v16 = vunpack.c.l.bf16 %v1259_v8  ;;  %v230_v17 = vunpack.c.h.bf16 %v1259_v8  ;;  %v1307_v30 = vld [vmem:[%s1232_s5 + $0x40] sm:$0xff]  ;;  %v1310_v31 = vld [vmem:[%s1232_s5 + $0x48] sm:$0xff]  ;;  %v1325_v38 = vld [vmem:[%s1232_s5 + $0x50] sm:$0xff]  ;;  %p1010_p12 = scmp.ne.s32.totalorder %s1709_s20, %s1009_s30  ;;  %p1775_p1 = scmp.ne.s32.totalorder %s1765_s24, 0 }
  0x4b   : > { %v256_v18 = vadd.f32 %v224_v10, %v223_v9  ;;  %v262_v19 = vadd.f32 %v228_v12, %v227_v11  ;;  %v231_v20 = vunpack.c.l.bf16 %v1266_v13  ;;  %v232_v21 = vunpack.c.h.bf16 %v1266_v13  ;;  %v1328_v39 = vld [vmem:[%s1232_s5 + $0x58] sm:$0xff]  ;;  %v1343_v46 = vld [vmem:[%s1232_s5 + $0x60] sm:$0xff]  ;;  %v1346_v47 = vld [vmem:[%s1232_s5 + $0x68] sm:$0xff]  ;;  %s1083_s8 = smov [#allocation7]  }
  0x4c   : > { %254 = vadd.xlane.f32.xlu0 %v253_v14  ;;  %260 = vadd.xlane.f32.xlu1 %v259_v15  ;;  %v265_v24 = vadd.f32 %v230_v17, %v229_v16  ;;  %v233_v25 = vunpack.c.l.bf16 %v1289_v22  ;;  %v234_v27 = vunpack.c.h.bf16 %v1289_v22  ;;  %v235_v28 = vunpack.c.l.bf16 %v1292_v23  ;;  %v1361_v54 = vld [vmem:[%s1232_s5 + $0x70] sm:$0xff]  ;;  %v1364_v55 = vld [vmem:[%s1232_s5 + $0x78] sm:$0xff]  ;;  %p1011_p7 = pnand %p1010_p12, %p1775_p1  ;;  %s1013_s9 = sshll.u32 %s1083_s8, 4  ;;  %s1014_s9 = int_to_ptr.vmem [resolvable:$false] %s1013_s9 }
  0x4d   : > { %v268_v26 = vadd.f32 %v232_v21, %v231_v20  ;;  %v236_v29 = vunpack.c.h.bf16 %v1292_v23  ;;  %v237_v32 = vunpack.c.l.bf16 %v1307_v30  ;;  %v238_v33 = vunpack.c.h.bf16 %v1307_v30  ;;  %s1015_s10 = scalar_lea.vmem %s1014_s9, 4096  ;;  %p1016_p9 = scmp.lt.s32.totalorder %s1709_s20, %s1014_s9 }
  0x4e   : > { %v271_v34 = vadd.f32 %v234_v27, %v233_v25  ;;  %v239_v36 = vunpack.c.l.bf16 %v1310_v31  ;;  %v240_v37 = vunpack.c.h.bf16 %v1310_v31  ;;  %v241_v41 = vunpack.c.l.bf16 %v1325_v38  ;;  %p1012_p8 = pneg %p1011_p7  ;;  %p1017_p10 = scmp.lt.s32.totalorder %s1015_s10, %s1009_s30 }
  0x4f   : > { %v274_v35 = vadd.f32 %v236_v29, %v235_v28  ;;  %v277_v40 = vadd.f32 %v238_v33, %v237_v32  ;;  %v242_v43 = vunpack.c.h.bf16 %v1325_v38  ;;  %v243_v44 = vunpack.c.l.bf16 %v1328_v39 }
  0x50   : > { %257 = vadd.xlane.f32.xlu0 %v256_v18  ;;  %263 = vadd.xlane.f32.xlu1 %v262_v19  ;;  %v280_v42 = vadd.f32 %v240_v37, %v239_v36  ;;  %v244_v45 = vunpack.c.h.bf16 %v1328_v39  ;;  %v245_v48 = vunpack.c.l.bf16 %v1343_v46  ;;  %v246_v49 = vunpack.c.h.bf16 %v1343_v46  ;;  %p1018_p2 = por %p1017_p10, %p1016_p9 }
  0x51   : > { %v283_v50 = vadd.f32 %v242_v43, %v241_v41  ;;  %v247_v52 = vunpack.c.l.bf16 %v1346_v47  ;;  %v248_v53 = vunpack.c.h.bf16 %v1346_v47  ;;  %v249_v57 = vunpack.c.l.bf16 %v1361_v54 }
  0x52   : > { %v286_v51 = vadd.f32 %v244_v45, %v243_v44  ;;  %v289_v56 = vadd.f32 %v246_v49, %v245_v48  ;;  %v250_v59 = vunpack.c.h.bf16 %v1361_v54  ;;  %v251_v60 = vunpack.c.l.bf16 %v1364_v55  ;;  %p1019_p0 = pnand %p1018_p2, %p1012_p8 }
  0x53   : > { %v292_v58 = vadd.f32 %v248_v53, %v247_v52  ;;  %v252_v61 = vunpack.c.h.bf16 %v1364_v55 }
  0x54   : > { %266 = vadd.xlane.f32.xlu0 %v265_v24  ;;  %269 = vadd.xlane.f32.xlu1 %v268_v26  ;;  %v295_v62 = vadd.f32 %v250_v59, %v249_v57 }
  0x55   : > { %v298_v63 = vadd.f32 %v252_v61, %v251_v60 }
  0x58   : > { %272 = vadd.xlane.f32.xlu0 %v271_v34  ;;  %275 = vadd.xlane.f32.xlu1 %v274_v35 }
  0x5c   : > { %278 = vadd.xlane.f32.xlu0 %v277_v40  ;;  %281 = vadd.xlane.f32.xlu1 %v280_v42 }
  0x60   : > { %284 = vadd.xlane.f32.xlu0 %v283_v50  ;;  %287 = vadd.xlane.f32.xlu1 %v286_v51 }
  0x64   : > { %290 = vadd.xlane.f32.xlu0 %v289_v56  ;;  %293 = vadd.xlane.f32.xlu1 %v292_v58 }
  0x68   : > { %296 = vadd.xlane.f32.xlu0 %v295_v62  ;;  %299 = vadd.xlane.f32.xlu1 %v298_v63 }
  0xd5   : > { %v255_v14 = vpop.xlane.xlu0 %254  ;;  %v261_v15 = vpop.xlane.xlu1 %260 }
  0xd6   : > { %v302_v18 = vmul.f32 0.00390625, %v255_v14  ;;  %v304_v19 = vmul.f32 0.00390625, %v261_v15 }
  0xd8   : > { %v1388_v24 = vsub.f32 %v221_v3, %v302_v18  ;;  %v1392_v26 = vsub.f32 %v222_v4, %v302_v18  ;;  %v1396_v34 = vsub.f32 %v225_v5, %v304_v19  ;;  %v1400_v35 = vsub.f32 %v226_v6, %v304_v19 }
  0xd9   : > { %v258_v40 = vpop.xlane.xlu0 %257  ;;  %v264_v42 = vpop.xlane.xlu1 %263 }
  0xda   : > { %v303_v50 = vmul.f32 0.00390625, %v258_v40  ;;  %v305_v51 = vmul.f32 0.00390625, %v264_v42  ;;  %v350_v3 = vmul.f32 %v1388_v24, %v1388_v24  ;;  %v351_v0 = vmul.f32 %v1392_v26, %v1392_v26 }
  0xdb   : > { %v354_v4 = vmul.f32 %v1396_v34, %v1396_v34  ;;  %v355_v5 = vmul.f32 %v1400_v35, %v1400_v35 }
  0xdc   : > { %v1412_v1 = vsub.f32 %v223_v9, %v303_v50  ;;  %v1416_v6 = vsub.f32 %v224_v10, %v303_v50  ;;  %v1420_v56 = vsub.f32 %v227_v11, %v305_v51  ;;  %v1424_v58 = vsub.f32 %v228_v12, %v305_v51 }
  0xdd   : > { %v267_v62 = vpop.xlane.xlu0 %266  ;;  %v382_v63 = vadd.f32 %v351_v0, %v350_v3  ;;  %v270_v14 = vpop.xlane.xlu1 %269  ;;  %v388_v10 = vadd.f32 %v355_v5, %v354_v4 }
  0xde   : > { %v306_v15 = vmul.f32 0.00390625, %v267_v62  ;;  %v307_v18 = vmul.f32 0.00390625, %v270_v14  ;;  %v352_v9 = vmul.f32 %v1412_v1, %v1412_v1  ;;  %v353_v2 = vmul.f32 %v1416_v6, %v1416_v6 }
  0xdf   : > { %383 = vadd.xlane.f32.xlu0 %v382_v63  ;;  %v356_v11 = vmul.f32 %v1420_v56, %v1420_v56  ;;  %v357_v7 = vmul.f32 %v1424_v58, %v1424_v58 }
  0xe0   : > { %v1436_v12 = vsub.f32 %v229_v16, %v306_v15  ;;  %v1440_v19 = vsub.f32 %v230_v17, %v306_v15  ;;  %v1444_v40 = vsub.f32 %v231_v20, %v307_v18  ;;  %v1448_v42 = vsub.f32 %v232_v21, %v307_v18 }
  0xe1   : > { %v273_v50 = vpop.xlane.xlu0 %272  ;;  %v385_v51 = vadd.f32 %v353_v2, %v352_v9  ;;  %v276_v3 = vpop.xlane.xlu1 %275  ;;  %v391_v17 = vadd.f32 %v357_v7, %v356_v11 }
  0xe2   : > { %v308_v0 = vmul.f32 0.00390625, %v273_v50  ;;  %v309_v4 = vmul.f32 0.00390625, %v276_v3  ;;  %v358_v16 = vmul.f32 %v1436_v12, %v1436_v12  ;;  %v359_v8 = vmul.f32 %v1440_v19, %v1440_v19 }
  0xe3   : > { %389 = vadd.xlane.f32.xlu0 %v388_v10  ;;  %386 = vadd.xlane.f32.xlu1 %v385_v51  ;;  %v360_v20 = vmul.f32 %v1444_v40, %v1444_v40  ;;  %v361_v13 = vmul.f32 %v1448_v42, %v1448_v42 }
  0xe4   : > { %v1460_v21 = vsub.f32 %v233_v25, %v308_v0  ;;  %v1464_v5 = vsub.f32 %v234_v27, %v308_v0  ;;  %v1468_v62 = vsub.f32 %v235_v28, %v309_v4  ;;  %v1472_v63 = vsub.f32 %v236_v29, %v309_v4 }
  0xe5   : > { %v279_v14 = vpop.xlane.xlu0 %278  ;;  %v394_v15 = vadd.f32 %v359_v8, %v358_v16  ;;  %v282_v18 = vpop.xlane.xlu1 %281  ;;  %v397_v27 = vadd.f32 %v361_v13, %v360_v20 }
  0xe6   : > { %v310_v9 = vmul.f32 0.00390625, %v279_v14  ;;  %v311_v2 = vmul.f32 0.00390625, %v282_v18  ;;  %v362_v25 = vmul.f32 %v1460_v21, %v1460_v21  ;;  %v363_v22 = vmul.f32 %v1464_v5, %v1464_v5 }
  0xe7   : > { %392 = vadd.xlane.f32.xlu1 %v391_v17  ;;  %395 = vadd.xlane.f32.xlu0 %v394_v15  ;;  %v364_v28 = vmul.f32 %v1468_v62, %v1468_v62  ;;  %v365_v23 = vmul.f32 %v1472_v63, %v1472_v63 }
  0xe8   : > { %v1484_v29 = vsub.f32 %v237_v32, %v310_v9  ;;  %v1488_v10 = vsub.f32 %v238_v33, %v310_v9  ;;  %v1492_v11 = vsub.f32 %v239_v36, %v311_v2  ;;  %v1496_v7 = vsub.f32 %v240_v37, %v311_v2 }
  0xe9   : > { %v285_v50 = vpop.xlane.xlu0 %284  ;;  %v400_v51 = vadd.f32 %v363_v22, %v362_v25  ;;  %v288_v3 = vpop.xlane.xlu1 %287  ;;  %v403_v33 = vadd.f32 %v365_v23, %v364_v28 }
  0xea   : > { %v312_v0 = vmul.f32 0.00390625, %v285_v50  ;;  %v313_v4 = vmul.f32 0.00390625, %v288_v3  ;;  %v366_v32 = vmul.f32 %v1484_v29, %v1484_v29  ;;  %v367_v30 = vmul.f32 %v1488_v10, %v1488_v10 }
  0xeb   : > { %398 = vadd.xlane.f32.xlu1 %v397_v27  ;;  %401 = vadd.xlane.f32.xlu0 %v400_v51  ;;  %v368_v36 = vmul.f32 %v1492_v11, %v1492_v11  ;;  %v369_v31 = vmul.f32 %v1496_v7, %v1496_v7 }
  0xec   : > { %v1508_v37 = vsub.f32 %v241_v41, %v312_v0  ;;  %v1512_v16 = vsub.f32 %v242_v43, %v312_v0  ;;  %v1516_v8 = vsub.f32 %v243_v44, %v313_v4  ;;  %v1520_v17 = vsub.f32 %v244_v45, %v313_v4 }
  0xed   : > { %v291_v20 = vpop.xlane.xlu0 %290  ;;  %v406_v13 = vadd.f32 %v367_v30, %v366_v32  ;;  %v294_v14 = vpop.xlane.xlu1 %293  ;;  %v409_v43 = vadd.f32 %v369_v31, %v368_v36  ;;  %v512_v31 = vlaneseq }
  0xee   : > { %v314_v15 = vmul.f32 0.00390625, %v291_v20  ;;  %v315_v18 = vmul.f32 0.00390625, %v294_v14  ;;  %v370_v41 = vmul.f32 %v1508_v37, %v1508_v37  ;;  %v371_v38 = vmul.f32 %v1512_v16, %v1512_v16 }
  0xef   : > { %404 = vadd.xlane.f32.xlu1 %v403_v33  ;;  %407 = vadd.xlane.f32.xlu0 %v406_v13  ;;  %v372_v44 = vmul.f32 %v1516_v8, %v1516_v8  ;;  %v373_v39 = vmul.f32 %v1520_v17, %v1520_v17 }
  0xf0   : > { %v1532_v45 = vsub.f32 %v245_v48, %v314_v15  ;;  %v1536_v9 = vsub.f32 %v246_v49, %v314_v15  ;;  %v1540_v2 = vsub.f32 %v247_v52, %v315_v18  ;;  %v1544_v25 = vsub.f32 %v248_v53, %v315_v18 }
  0xf1   : > { %v297_v22 = vpop.xlane.xlu0 %296  ;;  %v412_v27 = vadd.f32 %v371_v38, %v370_v41  ;;  %v300_v28 = vpop.xlane.xlu1 %299  ;;  %v415_v49 = vadd.f32 %v373_v39, %v372_v44  ;;  %v513_v38 = vshrl.u32 %v512_v31, 7 }
  0xf2   : > { %v316_v23 = vmul.f32 0.00390625, %v297_v22  ;;  %v317_v50 = vmul.f32 0.00390625, %v300_v28  ;;  %v374_v48 = vmul.f32 %v1532_v45, %v1532_v45  ;;  %v375_v46 = vmul.f32 %v1536_v9, %v1536_v9 }
  0xf3   : > { %410 = vadd.xlane.f32.xlu1 %v409_v43  ;;  %413 = vadd.xlane.f32.xlu0 %v412_v27  ;;  %v376_v52 = vmul.f32 %v1540_v2, %v1540_v2  ;;  %v377_v47 = vmul.f32 %v1544_v25, %v1544_v25 }
  0xf4   : > { %v1556_v53 = vsub.f32 %v249_v57, %v316_v23  ;;  %v1560_v51 = vsub.f32 %v250_v59, %v316_v23  ;;  %v1564_v3 = vsub.f32 %v251_v60, %v317_v50  ;;  %v1568_v0 = vsub.f32 %v252_v61, %v317_v50 }
  0xf5   : > { %v418_v4 = vadd.f32 %v375_v46, %v374_v48  ;;  %v421_v54 = vadd.f32 %v377_v47, %v376_v52  ;;  %v514_v23 = vsub.s32 0, %v513_v38  ;;  %v510_v46 = vld [vmem:[#allocation5] sm:$0x3] }
  0xf6   : > { %v378_v32 = vmul.f32 %v1556_v53, %v1556_v53  ;;  %v379_v57 = vmul.f32 %v1560_v51, %v1560_v51  ;;  %v380_v59 = vmul.f32 %v1564_v3, %v1564_v3  ;;  %v381_v60 = vmul.f32 %v1568_v0, %v1568_v0 }
  0xf7   : > { %416 = vadd.xlane.f32.xlu1 %v415_v49  ;;  %419 = vadd.xlane.f32.xlu0 %v418_v4  ;;  %v518_v49 = vsub.s32 1, %v513_v38  ;;  %v554_v4 = vld [vmem:[%s1757_s2] sm:$0x3] }
  0xf8   : > { %v424_v30 = vadd.f32 %v379_v57, %v378_v32  ;;  %v427_v55 = vadd.f32 %v381_v60, %v380_v59 }
  0xf9   : > { %v1587_v31 = vrot.slane %v554_v4, %v518_v49 }
  0xfb   : > { %422 = vadd.xlane.f32.xlu1 %v421_v54  ;;  %425 = vadd.xlane.f32.xlu0 %v424_v30  ;;  %v1581_v54 = vrot.slane %v510_v46, %v514_v23  ;;  %v1583_v30 = vrot.slane %v510_v46, %v518_v49 }
  0xff   : > { %428 = vadd.xlane.f32.xlu1 %v427_v55 }
 0x168   : > { %v384_v61 = vpop.xlane.xlu0 %383 }
 0x169   : > { %v430_v33 = vmul.f32 0.00390625, %v384_v61 }
 0x16b   : > { %v446_v36 = vadd.f32 1e-12, %v430_v33 }
 0x16c   : > { %v387_v20 = vpop.xlane.xlu1 %386  ;;  %v390_v13 = vpop.xlane.xlu0 %389 }
 0x16d   : > { %923 = vrsqrt.f32 %v446_v36  ;;  %v431_v14 = vmul.f32 0.00390625, %v387_v20  ;;  %v432_v15 = vmul.f32 0.00390625, %v390_v13  ;;  %v1585_v36 = vrot.slane %v554_v4, %v514_v23 }
 0x16f   : > { %v447_v18 = vadd.f32 1e-12, %v431_v14  ;;  %v448_v41 = vadd.f32 1e-12, %v432_v15 }
 0x170   : > { %v393_v43 = vpop.xlane.xlu1 %392  ;;  %v396_v44 = vpop.xlane.xlu0 %395 }
 0x171   : > { %925 = vrsqrt.f32 %v447_v18  ;;  %v433_v39 = vmul.f32 0.00390625, %v393_v43  ;;  %v434_v22 = vmul.f32 0.00390625, %v396_v44 }
 0x172   : > { %927 = vrsqrt.f32 %v448_v41 }
 0x173   : > { %v449_v27 = vadd.f32 1e-12, %v433_v39  ;;  %v450_v28 = vadd.f32 1e-12, %v434_v22 }
 0x174   : > { %v399_v50 = vpop.xlane.xlu1 %398  ;;  %v402_v48 = vpop.xlane.xlu0 %401 }
 0x175   : > { %929 = vrsqrt.f32 %v449_v27  ;;  %v435_v52 = vmul.f32 0.00390625, %v399_v50  ;;  %v436_v47 = vmul.f32 0.00390625, %v402_v48 }
 0x176   : > { %931 = vrsqrt.f32 %v450_v28 }
 0x177   : > { %v451_v32 = vadd.f32 1e-12, %v435_v52  ;;  %v452_v57 = vadd.f32 1e-12, %v436_v47 }
 0x178   : > { %v405_v59 = vpop.xlane.xlu1 %404  ;;  %v408_v60 = vpop.xlane.xlu0 %407 }
 0x179   : > { %933 = vrsqrt.f32 %v451_v32  ;;  %v437_v55 = vmul.f32 0.00390625, %v405_v59  ;;  %v438_v61 = vmul.f32 0.00390625, %v408_v60 }
 0x17a   : > { %v924_v33 = vpop.eup %923  ;;  %935 = vrsqrt.f32 %v452_v57 }
 0x17b   : > { %v478_v20 = vmul.f32 %v924_v33, %v1388_v24  ;;  %v479_v13 = vmul.f32 %v924_v33, %v1392_v26  ;;  %v453_v14 = vadd.f32 1e-12, %v437_v55  ;;  %v454_v15 = vadd.f32 1e-12, %v438_v61 }
 0x17c   : > { %v411_v18 = vpop.xlane.xlu1 %410  ;;  %v414_v41 = vpop.xlane.xlu0 %413 }
 0x17d   : > { %v522_v38 = vmul.f32 %v1581_v54, %v478_v20  ;;  %v523_v43 = vmul.f32 %v1583_v30, %v479_v13  ;;  %937 = vrsqrt.f32 %v453_v14  ;;  %v439_v44 = vmul.f32 0.00390625, %v411_v18 }
 0x17e   : > { %v926_v39 = vpop.eup %925  ;;  %939 = vrsqrt.f32 %v454_v15  ;;  %v440_v22 = vmul.f32 0.00390625, %v414_v41 }
 0x17f   : > { %v928_v27 = vpop.eup %927  ;;  %v566_v28 = vadd.f32 %v1585_v36, %v522_v38  ;;  %v567_v24 = vadd.f32 %v1587_v31, %v523_v43  ;;  %v480_v26 = vmul.f32 %v926_v39, %v1412_v1  ;;  %v481_v23 = vmul.f32 %v926_v39, %v1416_v6 }
 0x180   : > { %v482_v50 = vmul.f32 %v928_v27, %v1396_v34  ;;  %v483_v48 = vmul.f32 %v928_v27, %v1400_v35  ;;  %v455_v46 = vadd.f32 1e-12, %v439_v44  ;;  %v456_v49 = vadd.f32 1e-12, %v440_v22  ;;  %v417_v52 = vpop.xlane.xlu1 %416  ;;  %v420_v47 = vpop.xlane.xlu0 %419 }
 0x181   : > { %v844_v4 = vpack.c.bf16 %v567_v24, %v566_v28  ;;  %v524_v32 = vmul.f32 %v1581_v54, %v480_v26  ;;  %v525_v57 = vmul.f32 %v1583_v30, %v481_v23  ;;  %v441_v59 = vmul.f32 0.00390625, %v417_v52 }
 0x182   : > { %v930_v60 = vpop.eup %929  ;;  %v526_v1 = vmul.f32 %v1581_v54, %v482_v50  ;;  %v527_v6 = vmul.f32 %v1583_v30, %v483_v48  ;;  %941 = vrsqrt.f32 %v455_v46  ;;  %v442_v34 = vmul.f32 0.00390625, %v420_v47 }
 0x183   : > { %v932_v55 = vpop.eup %931  ;;  %694 = vst [vmem:[%s1605_s4] sm:$0xff] %v844_v4  ;;  %v568_v35 = vadd.f32 %v1585_v36, %v524_v32  ;;  %v569_v61 = vadd.f32 %v1587_v31, %v525_v57  ;;  %v484_v33 = vmul.f32 %v930_v60, %v1420_v56  ;;  %v485_v20 = vmul.f32 %v930_v60, %v1424_v58 }
 0x184   : > { %v570_v13 = vadd.f32 %v1585_v36, %v526_v1  ;;  %v571_v14 = vadd.f32 %v1587_v31, %v527_v6  ;;  %v486_v15 = vmul.f32 %v932_v55, %v1436_v12  ;;  %v487_v18 = vmul.f32 %v932_v55, %v1440_v19  ;;  %v423_v27 = vpop.xlane.xlu1 %422 }
 0x185   : > { %v845_v41 = vpack.c.bf16 %v569_v61, %v568_v35  ;;  %v528_v38 = vmul.f32 %v1581_v54, %v484_v33  ;;  %v529_v43 = vmul.f32 %v1583_v30, %v485_v20  ;;  %943 = vrsqrt.f32 %v456_v49  ;;  %v426_v61 = vpop.xlane.xlu0 %425 }
 0x186   : > { %v934_v44 = vpop.eup %933  ;;  %v846_v56 = vpack.c.bf16 %v571_v14, %v570_v13  ;;  %v530_v58 = vmul.f32 %v1581_v54, %v486_v15  ;;  %v531_v39 = vmul.f32 %v1583_v30, %v487_v18  ;;  %v457_v22 = vadd.f32 1e-12, %v441_v59 }
 0x187   : > { %v936_v28 = vpop.eup %935  ;;  %695 = vst [vmem:[%s1605_s4 + $0x8] sm:$0xff] %v845_v41  ;;  %v572_v12 = vadd.f32 %v1585_v36, %v528_v38  ;;  %v573_v19 = vadd.f32 %v1587_v31, %v529_v43  ;;  %v488_v24 = vmul.f32 %v934_v44, %v1444_v40  ;;  %v489_v26 = vmul.f32 %v934_v44, %v1448_v42 }
 0x188   : > { %696 = vst [vmem:[%s1605_s4 + $0x10] sm:$0xff] %v846_v56  ;;  %v574_v23 = vadd.f32 %v1585_v36, %v530_v58  ;;  %v575_v50 = vadd.f32 %v1587_v31, %v531_v39  ;;  %v490_v48 = vmul.f32 %v936_v28, %v1460_v21  ;;  %v491_v46 = vmul.f32 %v936_v28, %v1464_v5  ;;  %v429_v33 = vpop.xlane.xlu1 %428 }
 0x189   : > { %v847_v49 = vpack.c.bf16 %v573_v19, %v572_v12  ;;  %v532_v52 = vmul.f32 %v1581_v54, %v488_v24  ;;  %v533_v47 = vmul.f32 %v1583_v30, %v489_v26  ;;  %945 = vrsqrt.f32 %v457_v22 }
 0x18a   : > { %v938_v40 = vpop.eup %937  ;;  %v848_v4 = vpack.c.bf16 %v575_v50, %v574_v23  ;;  %v534_v42 = vmul.f32 %v1581_v54, %v490_v48  ;;  %v535_v32 = vmul.f32 %v1583_v30, %v491_v46  ;;  %v458_v57 = vadd.f32 1e-12, %v442_v34 }
 0x18b   : > { %v940_v59 = vpop.eup %939  ;;  %697 = vst [vmem:[%s1605_s4 + $0x18] sm:$0xff] %v847_v49  ;;  %v576_v21 = vadd.f32 %v1585_v36, %v532_v52  ;;  %v577_v5 = vadd.f32 %v1587_v31, %v533_v47  ;;  %v492_v60 = vmul.f32 %v938_v40, %v1468_v62  ;;  %v493_v1 = vmul.f32 %v938_v40, %v1472_v63 }
 0x18c   : > { %698 = vst [vmem:[%s1605_s4 + $0x20] sm:$0xff] %v848_v4  ;;  %v578_v6 = vadd.f32 %v1585_v36, %v534_v42  ;;  %v579_v55 = vadd.f32 %v1587_v31, %v535_v32  ;;  %v494_v35 = vmul.f32 %v940_v59, %v1484_v29  ;;  %v495_v34 = vmul.f32 %v940_v59, %v1488_v10 }
 0x18d   : > { %v849_v20 = vpack.c.bf16 %v577_v5, %v576_v21  ;;  %v536_v13 = vmul.f32 %v1581_v54, %v492_v60  ;;  %v537_v62 = vmul.f32 %v1583_v30, %v493_v1  ;;  %947 = vrsqrt.f32 %v458_v57 }
 0x18e   : > { %v850_v63 = vpack.c.bf16 %v579_v55, %v578_v6  ;;  %v538_v14 = vmul.f32 %v1581_v54, %v494_v35  ;;  %v539_v15 = vmul.f32 %v1583_v30, %v495_v34  ;;  %v443_v18 = vmul.f32 0.00390625, %v423_v27 }
 0x18f   : > { %v942_v41 = vpop.eup %941  ;;  %699 = vst [vmem:[%s1605_s4 + $0x28] sm:$0xff] %v849_v20  ;;  %v580_v29 = vadd.f32 %v1585_v36, %v536_v13  ;;  %v581_v10 = vadd.f32 %v1587_v31, %v537_v62  ;;  %v444_v38 = vmul.f32 0.00390625, %v426_v61  ;;  %v445_v43 = vmul.f32 0.00390625, %v429_v33 }
 0x190   : > { %700 = vst [vmem:[%s1605_s4 + $0x30] sm:$0xff] %v850_v63  ;;  %v582_v44 = vadd.f32 %v1585_v36, %v538_v14  ;;  %v583_v56 = vadd.f32 %v1587_v31, %v539_v15  ;;  %v496_v58 = vmul.f32 %v942_v41, %v1492_v11  ;;  %v497_v39 = vmul.f32 %v942_v41, %v1496_v7 }
 0x191   : > { %v851_v22 = vpack.c.bf16 %v581_v10, %v580_v29  ;;  %v459_v27 = vadd.f32 1e-12, %v443_v18  ;;  %v460_v28 = vadd.f32 1e-12, %v444_v38  ;;  %v461_v12 = vadd.f32 1e-12, %v445_v43 }
 0x192   : > { %v944_v19 = vpop.eup %943  ;;  %v852_v24 = vpack.c.bf16 %v583_v56, %v582_v44  ;;  %v540_v26 = vmul.f32 %v1581_v54, %v496_v58  ;;  %v541_v23 = vmul.f32 %v1583_v30, %v497_v39 }
 0x193   : > { %701 = vst [vmem:[%s1605_s4 + $0x38] sm:$0xff] %v851_v22  ;;  %v498_v50 = vmul.f32 %v944_v19, %v1508_v37  ;;  %v499_v48 = vmul.f32 %v944_v19, %v1512_v16  ;;  %949 = vrsqrt.f32 %v459_v27 }
 0x194   : > { %702 = vst [vmem:[%s1605_s4 + $0x40] sm:$0xff] %v852_v24  ;;  %v584_v11 = vadd.f32 %v1585_v36, %v540_v26  ;;  %v585_v7 = vadd.f32 %v1587_v31, %v541_v23  ;;  %951 = vrsqrt.f32 %v460_v28 }
 0x195   : > { %v542_v46 = vmul.f32 %v1581_v54, %v498_v50  ;;  %v543_v49 = vmul.f32 %v1583_v30, %v499_v48  ;;  %953 = vrsqrt.f32 %v461_v12 }
 0x196   : > { %v946_v52 = vpop.eup %945  ;;  %v853_v47 = vpack.c.bf16 %v585_v7, %v584_v11 }
 0x197   : > { %v586_v37 = vadd.f32 %v1585_v36, %v542_v46  ;;  %v587_v40 = vadd.f32 %v1587_v31, %v543_v49  ;;  %v500_v16 = vmul.f32 %v946_v52, %v1516_v8  ;;  %v501_v4 = vmul.f32 %v946_v52, %v1520_v17 }
 0x198   : > { %703 = vst [vmem:[%s1605_s4 + $0x48] sm:$0xff] %v853_v47 }
 0x199   : > { %v854_v42 = vpack.c.bf16 %v587_v40, %v586_v37  ;;  %v544_v32 = vmul.f32 %v1581_v54, %v500_v16  ;;  %v545_v57 = vmul.f32 %v1583_v30, %v501_v4 }
 0x19a   : > { %v948_v59 = vpop.eup %947 }
 0x19b   : > { %704 = vst [vmem:[%s1605_s4 + $0x50] sm:$0xff] %v854_v42  ;;  %v588_v21 = vadd.f32 %v1585_v36, %v544_v32  ;;  %v589_v5 = vadd.f32 %v1587_v31, %v545_v57  ;;  %v502_v60 = vmul.f32 %v948_v59, %v1532_v45  ;;  %v503_v1 = vmul.f32 %v948_v59, %v1536_v9 }
 0x19d   : > { %v855_v8 = vpack.c.bf16 %v589_v5, %v588_v21  ;;  %v546_v17 = vmul.f32 %v1581_v54, %v502_v60  ;;  %v547_v6 = vmul.f32 %v1583_v30, %v503_v1 }
 0x19f   : > { %705 = vst [vmem:[%s1605_s4 + $0x58] sm:$0xff] %v855_v8  ;;  %v590_v55 = vadd.f32 %v1585_v36, %v546_v17  ;;  %v591_v35 = vadd.f32 %v1587_v31, %v547_v6 }
 0x1a0   : > { %v950_v34 = vpop.eup %949 }
 0x1a1   : > { %v952_v61 = vpop.eup %951  ;;  %v856_v33 = vpack.c.bf16 %v591_v35, %v590_v55  ;;  %v504_v20 = vmul.f32 %v950_v34, %v1540_v2  ;;  %v505_v45 = vmul.f32 %v950_v34, %v1544_v25 }
 0x1a2   : > { %v954_v9 = vpop.eup %953  ;;  %v506_v13 = vmul.f32 %v952_v61, %v1556_v53  ;;  %v507_v62 = vmul.f32 %v952_v61, %v1560_v51 }
 0x1a3   : > { %706 = vst [vmem:[%s1605_s4 + $0x60] sm:$0xff] %v856_v33  ;;  %v548_v63 = vmul.f32 %v1581_v54, %v504_v20  ;;  %v549_v14 = vmul.f32 %v1583_v30, %v505_v45  ;;  %v508_v15 = vmul.f32 %v954_v9, %v1564_v3  ;;  %v509_v18 = vmul.f32 %v954_v9, %v1568_v0 }
 0x1a4   : > { %v550_v2 = vmul.f32 %v1581_v54, %v506_v13  ;;  %v551_v25 = vmul.f32 %v1583_v30, %v507_v62 }
 0x1a5   : > { %v592_v41 = vadd.f32 %v1585_v36, %v548_v63  ;;  %v593_v53 = vadd.f32 %v1587_v31, %v549_v14  ;;  %v552_v51 = vmul.f32 %v1581_v54, %v508_v15  ;;  %v553_v29 = vmul.f32 %v1583_v30, %v509_v18 }
 0x1a6   : > { %v594_v3 = vadd.f32 %v1585_v36, %v550_v2  ;;  %v595_v0 = vadd.f32 %v1587_v31, %v551_v25 }
 0x1a7   : > { %v857_v10 = vpack.c.bf16 %v593_v53, %v592_v41  ;;  %v596_v38 = vadd.f32 %v1585_v36, %v552_v51  ;;  %v597_v43 = vadd.f32 %v1587_v31, %v553_v29 }
 0x1a8   : > { %v858_v44 = vpack.c.bf16 %v595_v0, %v594_v3 }
 0x1a9   : > { %707 = vst [vmem:[%s1605_s4 + $0x68] sm:$0xff] %v857_v10  ;;  %v859_v54 = vpack.c.bf16 %v597_v43, %v596_v38 }
 0x1aa   : > { %708 = vst [vmem:[%s1605_s4 + $0x70] sm:$0xff] %v858_v44 }
 0x1ab   : > { %709 = vst [vmem:[%s1605_s4 + $0x78] sm:$0xff] %v859_v54 }
 0x1ac   : > { %1022 = shalt.err (!%p1019_p0)
}
 0x1ad   : > { %s1023_s17 = scalar_lea.hbm %s1707_s7, 2048  ;;  %s1027_s29 = scalar_lea.hbm %s1758_s3, 4096 }
 0x1ae   : > { %p1024_p4 = scmp.ne.s32.totalorder %s1707_s7, %s1023_s17  ;;  %p1028_p6 = scmp.lt.s32.totalorder %s1707_s7, %s1758_s3 }
 0x1af   : > { %p1029_p13 = scmp.lt.s32.totalorder %s1027_s29, %s1023_s17 }
 0x1b0   : > { %p1025_p11 = pnand %p1024_p4, %p1775_p1 }
 0x1b1   : > { %p1030_p3 = por %p1029_p13, %p1028_p6 }
 0x1b2   : > { %p1026_p5 = pneg %p1025_p11 }
 0x1b4   : > { %p1031_p12 = pnand %p1030_p3, %p1026_p5 }
 0x1b6   : > { %1034 = shalt.err (!%p1031_p12)
}
 0x1b7   : > { %s1084_s26 = smov 128   ;;  %s1085_s4 = smov 8  }
 0x1b8   : > { %868 = dma.vmem_to_hbm [thread:$0]  (%p1775_p1), %s1709_s20, 2048, %s1707_s7, %s711_s16, %s1084_s26, %s1084_s26, %s1085_s4  }
 0x1b9 PF: > { %s740_s11 = sand.u32 1, %s1065_s12   ;;  %p1776_p7 = scmp.ne.s32.totalorder %s1766_s25, 0 }
 0x1ba   : > { %p1777_p8 = scmp.ge.s32.totalorder %s1077_s15, 2  ;;  %s741_s22 = scalar_lea.sflag [#allocation4], %s740_s11 }
 0x1bc   : > { %p879_p9 = pnand %p1777_p8, %p1776_p7 }
 0x1be   : > { %p880_p10 = pneg %p879_p9 }
 0x1c0   : > { %1060 = dma.done.wait (%p880_p10), %s741_s22, 2048  }
 0x1c1   : > { %1062 = vsyncadd (%p880_p10), %s741_s22, 4294965248  ;;  %p17_p2 = scmp.ge.s32.totalorder %s1131_s18, 4   ;;  %s1778_s12 = smov %s1069_s13 }
 0x1c2   : > { %s1779_s13 = smov %s1073_s14  ;;  %s1780_s14 = smov %s1143_s21 }
 0x1c3   : > { %s1781_s15 = smov %s1131_s18  ;;  %19 = sbr.rel (!%p17_p2) target bundleno = 6 (0x6), region = 81 }
 0x1c8   :  { %746 = vsyncpa [#allocation3], 1 }
 0x1c9   :  { %748 = vsyncpa [#allocation3 + $0x1], 1 }
 0x1ca   :  { %749 = vsyncpa [#allocation6], 1 }
 0x1cb   :  { %750 = vsyncpa [#allocation4], 1 }
 0x1cc   :  { %752 = vsyncpa [#allocation4 + $0x1], 1 }

</bundles_post_ra>
